<compile_context>
chip_gen: v7x
topology: tpu7x:2x2x1
jax: 0.10.0
libtpu: 0.0.40
codegen_flags: <defaults>
</compile_context>

<pallas_src>
import functools

import jax
import jax.numpy as jnp
from jax import lax
from jax.experimental import pallas as pl
from jax.experimental.pallas import tpu as pltpu

_LOG2E = 1.4426950408889634


def _round_up(x, m):
    return ((x + m - 1) // m) * m


def _pick_tile(n, target, align):
    """Pick a tile size <= target (multiple of `align`) that minimizes padding."""
    n_aligned = _round_up(max(n, 1), align)
    num_tiles = -(-n_aligned // target)            # cdiv
    tile = _round_up(-(-n_aligned // num_tiles), align)
    return tile, num_tiles * tile


def _pick_kblock(k, target):
    num = -(-k // target)                          # cdiv
    kb = -(-k // num)
    return kb, num * kb


def _rbf_kernel(scale_ref, lengthscale_ref, x_ref, y_ref, out_ref, sdist_ref, *, kb):
    """Grid = (i, j, kblk).  sdist_ref caches clamped ||x_i - y_j||^2 for the
    current (i, j) tile; computed at kblk == 0 (k axis is innermost +
    "arbitrary") and reused across all k."""
    kblk = pl.program_id(2)

    @pl.when(kblk == 0)
    def _():
        x = x_ref[...]                                          # (TM, D)
        y = y_ref[...]                                          # (TN, D)
        xx = jnp.sum(x * x, axis=-1, keepdims=True)             # (TM, 1)
        yy = jnp.sum(y * y, axis=-1)[None, :]                   # (1, TN)
        # Contract on the last dim of both operands (no in-kernel transpose).
        xy = lax.dot_general(
            x, y,
            dimension_numbers=(((1,), (1,)), ((), ())),
            precision=lax.Precision.HIGHEST,
            preferred_element_type=jnp.float32,
        )                                                       # (TM, TN)
        # Clamp expansion round-off at 0.
        sdist_ref[...] = jnp.maximum(xx + yy - 2.0 * xy, 0.0)

    for kk in range(kb):                                        # static unroll over the k-block
        idx = kblk * kb + kk
        s = scale_ref[idx]                                      # SMEM scalar reads
        l = lengthscale_ref[idx]
        s2 = s * s
        c = (-0.5 * _LOG2E) / (l * l)                           # folded constant, scalar unit
        # Re-read the sdist tile per k to bound the vreg live range.
        out_ref[kk, :, :] = (s2 * jnp.exp2(sdist_ref[...] * c)).astype(out_ref.dtype)


def rbf_kernel_pallas(locations1, locations2, scale, lengthscale,
                      *, tm_target=256, tn_target=512, kb_target=16,
                      out_dtype=jnp.float32):
    """Returns K with shape [K, N1, N2]."""
    n1, d = locations1.shape
    n2, d2 = locations2.shape
    assert d == d2, (d, d2)
    (k,) = scale.shape

    f32 = jnp.float32
    x = locations1.astype(f32)
    y = locations2.astype(f32)

    # Shared-mean centering: squared distances are translation invariant, but
    # centering tames cancellation in the ||x||^2 + ||y||^2 - 2<x,y> expansion.
    mean = (jnp.sum(x, axis=0, keepdims=True) + jnp.sum(y, axis=0, keepdims=True)) / float(n1 + n2)
    x = x - mean
    y = y - mean

    # Tile selection: minimize padding while staying (8,128)-aligned.
    tm, n1_pad = _pick_tile(n1, tm_target, 8)
    tn, n2_pad = _pick_tile(n2, tn_target, 128)
    kb, k_pad = _pick_kblock(k, kb_target)

    # Pad rows only when needed (D stays unpadded: trailing block dim == array dim).
    if n1_pad != n1:
        x = jnp.zeros((n1_pad, d), f32).at[:n1, :].set(x)
    if n2_pad != n2:
        y = jnp.zeros((n2_pad, d), f32).at[:n2, :].set(y)

    s = scale.astype(f32)
    l = lengthscale.astype(f32)
    if k_pad != k:
        # Pad params with 1.0 so padded k entries stay finite (sliced off below).
        s = jnp.ones((k_pad,), f32).at[:k].set(s)
        l = jnp.ones((k_pad,), f32).at[:k].set(l)

    grid = (n1_pad // tm, n2_pad // tn, k_pad // kb)

    out = pl.pallas_call(
        functools.partial(_rbf_kernel, kb=kb),
        out_shape=jax.ShapeDtypeStruct((k_pad, n1_pad, n2_pad), out_dtype),
        grid_spec=pltpu.PrefetchScalarGridSpec(
            num_scalar_prefetch=0,
            grid=grid,
            in_specs=[
                # TODO(synk): for very large K, block these SMEM params per kblk
                # instead of shipping the full arrays (SMEM padding blow-up).
                pl.BlockSpec(memory_space=pltpu.MemorySpace.SMEM),      # scale       [K_pad]
                pl.BlockSpec(memory_space=pltpu.MemorySpace.SMEM),      # lengthscale [K_pad]
                pl.BlockSpec((tm, d), lambda i, j, kblk: (i, 0)),       # locations1 tile
                pl.BlockSpec((tn, d), lambda i, j, kblk: (j, 0)),       # locations2 tile
            ],
            out_specs=pl.BlockSpec((kb, tm, tn), lambda i, j, kblk: (kblk, i, j)),
            scratch_shapes=[pltpu.VMEM((tm, tn), f32)],                 # cached sdist tile
        ),
        compiler_params=pltpu.CompilerParams(
            # Spatial tiles shard across TensorCores; k stays sequential so the
            # sdist scratch reuse is valid.
            dimension_semantics=("parallel", "parallel", "arbitrary"),
            # ~17 MiB footprint at default tiles; 48 MiB limit is safe on v7x
            # (64 MiB physical) and leaves Mosaic internal-scratch headroom.
            vmem_limit_bytes=48 * 1024 * 1024,
        ),
    )(s, l, x, y)

    # Skip the (HBM-expensive) slice copy entirely when no padding happened.
    if (k_pad, n1_pad, n2_pad) != (k, n1, n2):
        out = out[:k, :n1, :n2]
    return out


def rbf_kernel_ref(locations1, locations2, scale, lengthscale):
    """Pure-JAX reference mirroring the PyTorch module exactly."""
    diff = locations1[:, None, :] - locations2[None, :, :]        # (N1, N2, D)
    sdist = jnp.sum(diff * diff, axis=-1)[None, :, :]             # (1, N1, N2)
    s2 = (scale ** 2)[:, None, None]
    l2 = (lengthscale ** 2)[:, None, None]
    return s2 * jnp.exp(-0.5 * sdist / l2)                        # (K, N1, N2)


if __name__ == "__main__":
    key = jax.random.PRNGKey(0)
    k1, k2, k3, k4 = jax.random.split(key, 4)

    # Small test matching the module's natural shapes.
    N1, N2, D, K = 16, 16, 8, 4
    locations1 = jax.random.normal(k1, (N1, D), dtype=jnp.float32)
    locations2 = jax.random.normal(k2, (N2, D), dtype=jnp.float32)
    scale = 1.0 + 0.1 * jnp.arange(K, dtype=jnp.float32)
    lengthscale = 0.5 + 0.25 * jnp.arange(K, dtype=jnp.float32)

    out = rbf_kernel_pallas(locations1, locations2, scale, lengthscale)
    out = jax.block_until_ready(out)
    ref = rbf_kernel_ref(locations1, locations2, scale, lengthscale)
    assert out.shape == (K, N1, N2), out.shape
    assert jnp.allclose(out, ref, atol=1e-4, rtol=1e-4), float(jnp.max(jnp.abs(out - ref)))

    # A non-aligned case to exercise padding / tiling / slicing.
    M1, M2, D2, K2 = 300, 200, 8, 5
    loc1b = jax.random.normal(k3, (M1, D2), dtype=jnp.float32)
    loc2b = jax.random.normal(k4, (M2, D2), dtype=jnp.float32)
    scale_b = 0.8 + 0.05 * jnp.arange(K2, dtype=jnp.float32)
    lengthscale_b = 0.7 + 0.1 * jnp.arange(K2, dtype=jnp.float32)

    out_b = rbf_kernel_pallas(loc1b, loc2b, scale_b, lengthscale_b)
    out_b = jax.block_until_ready(out_b)
    ref_b = rbf_kernel_ref(loc1b, loc2b, scale_b, lengthscale_b)
    assert out_b.shape == (K2, M1, M2), out_b.shape
    assert jnp.allclose(out_b, ref_b, atol=1e-4, rtol=1e-4), float(jnp.max(jnp.abs(out_b - ref_b)))

    print("KERNEL_OK")
</pallas_src>

<mosaic_0001>
module attributes {stable_mosaic.version = 11 : i64} {
  func.func @_rbf_kernel(%arg0: i32, %arg1: i32, %arg2: i32, %arg3: memref<4xf32, #tpu.memory_space<smem>>, %arg4: memref<4xf32, #tpu.memory_space<smem>>, %arg5: memref<16x8xf32, #tpu.memory_space<vmem>>, %arg6: memref<128x8xf32, #tpu.memory_space<vmem>>, %arg7: memref<4x16x128xf32, #tpu.memory_space<vmem>>, %arg8: memref<16x128xf32, #tpu.memory_space<vmem>>) attributes {dimension_semantics = [#tpu.dimension_semantics<parallel>, #tpu.dimension_semantics<parallel>, #tpu.dimension_semantics<arbitrary>], iteration_bounds = array<i64: 1, 1, 1>, scalar_prefetch = 0 : i64, scratch_operands = 1 : i64, tpu.core_type = #tpu.core_type<tc>, window_params = [{transform_indices = @transform_0, window_bounds = array<i64: 4>}, {transform_indices = @transform_1, window_bounds = array<i64: 4>}, {transform_indices = @transform_2, window_bounds = array<i64: 16, 8>}, {transform_indices = @transform_3, window_bounds = array<i64: 128, 8>}, {transform_indices = @transform_4, window_bounds = array<i64: 4, 16, 128>}]} {
    %c0_i32 = arith.constant 0 : i32
    %0 = arith.cmpi eq, %arg2, %c0_i32 : i32
    %1 = arith.extui %0 : i1 to i32
    %c0_i32_0 = arith.constant 0 : i32
    %2 = arith.cmpi ne, %1, %c0_i32_0 : i32
    scf.if %2 {
      %c0_24 = arith.constant 0 : index
      %c0_25 = arith.constant 0 : index
      %75 = vector.load %arg5[%c0_24, %c0_25] : memref<16x8xf32, #tpu.memory_space<vmem>>, vector<16x8xf32>
      %c0_26 = arith.constant 0 : index
      %c0_27 = arith.constant 0 : index
      %76 = vector.load %arg6[%c0_26, %c0_27] : memref<128x8xf32, #tpu.memory_space<vmem>>, vector<128x8xf32>
      %77 = arith.mulf %75, %75 : vector<16x8xf32>
      %cst_28 = arith.constant dense<0.000000e+00> : vector<16xf32>
      %78 = vector.multi_reduction <add>, %77, %cst_28 [1] : vector<16x8xf32> to vector<16xf32>
      %79 = vector.shape_cast %78 : vector<16xf32> to vector<16x1xf32>
      %80 = arith.mulf %76, %76 : vector<128x8xf32>
      %cst_29 = arith.constant dense<0.000000e+00> : vector<128xf32>
      %81 = vector.multi_reduction <add>, %80, %cst_29 [1] : vector<128x8xf32> to vector<128xf32>
      %82 = vector.shape_cast %81 : vector<128xf32> to vector<1x128xf32>
      %cst_30 = arith.constant dense<0.000000e+00> : vector<16x128xf32>
      %83 = tpu.matmul %75, %76, %cst_30 {dimension_numbers = #tpu.dot_dimension_numbers<[1], [1], [0], [0], [0, 0, 1, 0], [], []>, precision = #tpu.contract_precision<fp32>} : vector<16x8xf32>, vector<128x8xf32>, vector<16x128xf32> -> vector<16x128xf32>
      %84 = vector.broadcast %79 : vector<16x1xf32> to vector<16x128xf32>
      %85 = vector.broadcast %82 : vector<1x128xf32> to vector<16x128xf32>
      %86 = arith.addf %84, %85 : vector<16x128xf32>
      %cst_31 = arith.constant 2.000000e+00 : f32
      %87 = vector.broadcast %cst_31 : f32 to vector<16x128xf32>
      %88 = arith.mulf %87, %83 : vector<16x128xf32>
      %89 = arith.subf %86, %88 : vector<16x128xf32>
      %cst_32 = arith.constant 0.000000e+00 : f32
      %90 = vector.broadcast %cst_32 : f32 to vector<16x128xf32>
      %91 = arith.maximumf %89, %90 : vector<16x128xf32>
      %c0_33 = arith.constant 0 : index
      %c0_34 = arith.constant 0 : index
      %92 = vector.load %arg8[%c0_33, %c0_34] : memref<16x128xf32, #tpu.memory_space<vmem>>, vector<16x128xf32>
      tpu.vector_store %arg8[%c0_33, %c0_34], %91 {strides = array<i32>} : memref<16x128xf32, #tpu.memory_space<vmem>>, vector<16x128xf32>,
    } else {
    }
    %c4_i32 = arith.constant 4 : i32
    %3 = arith.muli %arg2, %c4_i32 : i32
    %c0_i32_1 = arith.constant 0 : i32
    %4 = arith.addi %3, %c0_i32_1 : i32
    %5 = arith.index_cast %4 : i32 to index
    %6 = memref.load %arg3[%5] : memref<4xf32, #tpu.memory_space<smem>>
    %7 = arith.index_cast %4 : i32 to index
    %8 = memref.load %arg4[%7] : memref<4xf32, #tpu.memory_space<smem>>
    %9 = arith.mulf %6, %6 : f32
    %10 = arith.mulf %8, %8 : f32
    %cst = arith.constant -0.72134751 : f32
    %11 = arith.divf %cst, %10 : f32
    %c0 = arith.constant 0 : index
    %c0_2 = arith.constant 0 : index
    %12 = vector.load %arg8[%c0, %c0_2] : memref<16x128xf32, #tpu.memory_space<vmem>>, vector<16x128xf32>
    %13 = vector.broadcast %11 : f32 to vector<16x128xf32>
    %14 = arith.mulf %12, %13 : vector<16x128xf32>
    %15 = math.exp2 %14 : vector<16x128xf32>
    %16 = vector.broadcast %9 : f32 to vector<16x128xf32>
    %17 = arith.mulf %16, %15 : vector<16x128xf32>
    %c0_3 = arith.constant 0 : index
    %c0_4 = arith.constant 0 : index
    %c0_5 = arith.constant 0 : index
    %18 = vector.load %arg7[%c0_3, %c0_4, %c0_5] : memref<4x16x128xf32, #tpu.memory_space<vmem>>, vector<1x16x128xf32>
    %19 = vector.shape_cast %18 : vector<1x16x128xf32> to vector<16x128xf32>
    %20 = vector.shape_cast %17 : vector<16x128xf32> to vector<1x16x128xf32>
    tpu.vector_store %arg7[%c0_3, %c0_4, %c0_5], %20 {strides = array<i32>} : memref<4x16x128xf32, #tpu.memory_space<vmem>>, vector<1x16x128xf32>,
    %c4_i32_6 = arith.constant 4 : i32
    %21 = arith.muli %arg2, %c4_i32_6 : i32
    %c1_i32 = arith.constant 1 : i32
    %22 = arith.addi %21, %c1_i32 : i32
    %23 = arith.index_cast %22 : i32 to index
    %24 = memref.load %arg3[%23] : memref<4xf32, #tpu.memory_space<smem>>
    %25 = arith.index_cast %22 : i32 to index
    %26 = memref.load %arg4[%25] : memref<4xf32, #tpu.memory_space<smem>>
    %27 = arith.mulf %24, %24 : f32
    %28 = arith.mulf %26, %26 : f32
    %cst_7 = arith.constant -0.72134751 : f32
    %29 = arith.divf %cst_7, %28 : f32
    %c0_8 = arith.constant 0 : index
    %c0_9 = arith.constant 0 : index
    %30 = vector.load %arg8[%c0_8, %c0_9] : memref<16x128xf32, #tpu.memory_space<vmem>>, vector<16x128xf32>
    %31 = vector.broadcast %29 : f32 to vector<16x128xf32>
    %32 = arith.mulf %30, %31 : vector<16x128xf32>
    %33 = math.exp2 %32 : vector<16x128xf32>
    %34 = vector.broadcast %27 : f32 to vector<16x128xf32>
    %35 = arith.mulf %34, %33 : vector<16x128xf32>
    %c1 = arith.constant 1 : index
    %c0_10 = arith.constant 0 : index
    %c0_11 = arith.constant 0 : index
    %36 = vector.load %arg7[%c1, %c0_10, %c0_11] : memref<4x16x128xf32, #tpu.memory_space<vmem>>, vector<1x16x128xf32>
    %37 = vector.shape_cast %36 : vector<1x16x128xf32> to vector<16x128xf32>
    %38 = vector.shape_cast %35 : vector<16x128xf32> to vector<1x16x128xf32>
    tpu.vector_store %arg7[%c1, %c0_10, %c0_11], %38 {strides = array<i32>} : memref<4x16x128xf32, #tpu.memory_space<vmem>>, vector<1x16x128xf32>,
    %c4_i32_12 = arith.constant 4 : i32
    %39 = arith.muli %arg2, %c4_i32_12 : i32
    %c2_i32 = arith.constant 2 : i32
    %40 = arith.addi %39, %c2_i32 : i32
    %41 = arith.index_cast %40 : i32 to index
    %42 = memref.load %arg3[%41] : memref<4xf32, #tpu.memory_space<smem>>
    %43 = arith.index_cast %40 : i32 to index
    %44 = memref.load %arg4[%43] : memref<4xf32, #tpu.memory_space<smem>>
    %45 = arith.mulf %42, %42 : f32
    %46 = arith.mulf %44, %44 : f32
    %cst_13 = arith.constant -0.72134751 : f32
    %47 = arith.divf %cst_13, %46 : f32
    %c0_14 = arith.constant 0 : index
    %c0_15 = arith.constant 0 : index
    %48 = vector.load %arg8[%c0_14, %c0_15] : memref<16x128xf32, #tpu.memory_space<vmem>>, vector<16x128xf32>
    %49 = vector.broadcast %47 : f32 to vector<16x128xf32>
    %50 = arith.mulf %48, %49 : vector<16x128xf32>
    %51 = math.exp2 %50 : vector<16x128xf32>
    %52 = vector.broadcast %45 : f32 to vector<16x128xf32>
    %53 = arith.mulf %52, %51 : vector<16x128xf32>
    %c2 = arith.constant 2 : index
    %c0_16 = arith.constant 0 : index
    %c0_17 = arith.constant 0 : index
    %54 = vector.load %arg7[%c2, %c0_16, %c0_17] : memref<4x16x128xf32, #tpu.memory_space<vmem>>, vector<1x16x128xf32>
    %55 = vector.shape_cast %54 : vector<1x16x128xf32> to vector<16x128xf32>
    %56 = vector.shape_cast %53 : vector<16x128xf32> to vector<1x16x128xf32>
    tpu.vector_store %arg7[%c2, %c0_16, %c0_17], %56 {strides = array<i32>} : memref<4x16x128xf32, #tpu.memory_space<vmem>>, vector<1x16x128xf32>,
    %c4_i32_18 = arith.constant 4 : i32
    %57 = arith.muli %arg2, %c4_i32_18 : i32
    %c3_i32 = arith.constant 3 : i32
    %58 = arith.addi %57, %c3_i32 : i32
    %59 = arith.index_cast %58 : i32 to index
    %60 = memref.load %arg3[%59] : memref<4xf32, #tpu.memory_space<smem>>
    %61 = arith.index_cast %58 : i32 to index
    %62 = memref.load %arg4[%61] : memref<4xf32, #tpu.memory_space<smem>>
    %63 = arith.mulf %60, %60 : f32
    %64 = arith.mulf %62, %62 : f32
    %cst_19 = arith.constant -0.72134751 : f32
    %65 = arith.divf %cst_19, %64 : f32
    %c0_20 = arith.constant 0 : index
    %c0_21 = arith.constant 0 : index
    %66 = vector.load %arg8[%c0_20, %c0_21] : memref<16x128xf32, #tpu.memory_space<vmem>>, vector<16x128xf32>
    %67 = vector.broadcast %65 : f32 to vector<16x128xf32>
    %68 = arith.mulf %66, %67 : vector<16x128xf32>
    %69 = math.exp2 %68 : vector<16x128xf32>
    %70 = vector.broadcast %63 : f32 to vector<16x128xf32>
    %71 = arith.mulf %70, %69 : vector<16x128xf32>
    %c3 = arith.constant 3 : index
    %c0_22 = arith.constant 0 : index
    %c0_23 = arith.constant 0 : index
    %72 = vector.load %arg7[%c3, %c0_22, %c0_23] : memref<4x16x128xf32, #tpu.memory_space<vmem>>, vector<1x16x128xf32>
    %73 = vector.shape_cast %72 : vector<1x16x128xf32> to vector<16x128xf32>
    %74 = vector.shape_cast %71 : vector<16x128xf32> to vector<1x16x128xf32>
    tpu.vector_store %arg7[%c3, %c0_22, %c0_23], %74 {strides = array<i32>} : memref<4x16x128xf32, #tpu.memory_space<vmem>>, vector<1x16x128xf32>,
    return
  }
  func.func @transform_0(%arg0: i32, %arg1: i32, %arg2: i32) -> i32 {
    %c0_i32 = arith.constant 0 : i32
    %c0_i32_0 = arith.constant 0 : i32
    return %c0_i32 : i32
  }
  func.func @transform_1(%arg0: i32, %arg1: i32, %arg2: i32) -> i32 {
    %c0_i32 = arith.constant 0 : i32
    %c0_i32_0 = arith.constant 0 : i32
    return %c0_i32 : i32
  }
  func.func @transform_2(%arg0: i32, %arg1: i32, %arg2: i32) -> (i32, i32) {
    %c0_i32 = arith.constant 0 : i32
    %c0_i32_0 = arith.constant 0 : i32
    return %arg0, %c0_i32 : i32, i32
  }
  func.func @transform_3(%arg0: i32, %arg1: i32, %arg2: i32) -> (i32, i32) {
    %c0_i32 = arith.constant 0 : i32
    %c0_i32_0 = arith.constant 0 : i32
    return %arg1, %c0_i32 : i32, i32
  }
  func.func @transform_4(%arg0: i32, %arg1: i32, %arg2: i32) -> (i32, i32, i32) {
    %c0_i32 = arith.constant 0 : i32
    return %arg2, %arg0, %arg1 : i32, i32, i32
  }
}

</mosaic_0001>

<bundles_post_ra>
// kernel: tpu_custom_call.1
= control target key start
LH: loop header
LB: loop body
LE: loop exit
PB: predicated region body
PF: predicated region fallthrough
CT: control target
= control target key end

     0   :  { %9 = vsyncpa [#allocation5], 0  ;;  %s2224_s0 = inlined_call_operand.vmem [shape: f32[4], index: 0, kind: input, shape index: {}]   ;;  %s2225_s1 = inlined_call_operand.vmem [shape: f32[4], index: 1, kind: input, shape index: {}]   ;;  %s2226_s2 = inlined_call_operand.vmem [shape: f32[16,8], index: 2, kind: input, shape index: {}]   ;;  %s2227_s3 = inlined_call_operand.vmem [shape: f32[128,8], index: 3, kind: input, shape index: {}]   ;;  %s2228_s4 = inlined_call_operand.hbm [shape: f32[4,16,128], index: 4, kind: output, shape index: {}]  }
   0x1   :  { %10 = vsyncpa [#allocation7], 0 }
   0x2   :  { %11 = vsyncpa [#allocation4], 0  ;;  %s18_s17 = sshll.u32 %s2224_s0, 4  ;;  %s28_s20 = sshll.u32 %s2225_s1, 4  ;;  %s19_s17 = int_to_ptr.vmem [resolvable:$true] %s18_s17  ;;  %s29_s20 = int_to_ptr.vmem [resolvable:$true] %s28_s20 }
   0x3   :  { %s1694_s21 = scalar_lea.vmem %s19_s17, 16  ;;  %p1699_p1 = scmp.lt.s32.totalorder %s19_s17, %s19_s17 }
   0x4   :  { %p1695_p0 = scmp.ne.s32.totalorder %s19_s17, %s1694_s21  ;;  %p1700_p2 = scmp.lt.s32.totalorder %s1694_s21, %s1694_s21 }
   0x6   :  { %p1701_p3 = por %p1700_p2, %p1699_p1 }
   0x8   :  { %p1702_p4 = pnand %p1701_p3, %p1695_p0 }
   0xa   :  { %1705 = shalt.err (!%p1702_p4)
}
   0xb   :  { %s1746_s22 = smov [#allocation3]   ;;  %s1706_s23 = scalar_lea.vmem %s29_s20, 16 }
   0xc   :  { %21 = dma.vmem_to_smem %s19_s17, 16, %s1746_s22, [#allocation5]  }
   0xd   :  { %p1707_p5 = scmp.ne.s32.totalorder %s29_s20, %s1706_s23  ;;  %p1711_p6 = scmp.lt.s32.totalorder %s29_s20, %s29_s20 }
   0xe   :  { %p1712_p7 = scmp.lt.s32.totalorder %s1706_s23, %s1706_s23 }
  0x10   :  { %p1713_p8 = por %p1712_p7, %p1711_p6 }
  0x12   :  { %p1714_p9 = pnand %p1713_p8, %p1707_p5 }
  0x14   :  { %1717 = shalt.err (!%p1714_p9)
}
  0x15   :  { %s1747_s0 = smov [#allocation6]  }
  0x16   :  { %31 = dma.vmem_to_smem %s29_s20, 16, %s1747_s0, [#allocation7]  }
  0x17   :  { %1740 = dma.done.wait [#allocation5], 16  }
  0x18   :  { %1741 = vsyncadd [#allocation5], 4294967280 }
  0x19   :  { %1742 = dma.done.wait [#allocation7], 16  }
  0x1a   :  { %1743 = vsyncadd [#allocation7], 4294967280 }
  0x1b   :  { %42 = sfence }
  0x1c   :  { %v1785_v0 = vld [vmem:[%s2227_s3] sm:$0xff]  ;;  %v1790_v1 = vld [vmem:[%s2227_s3 + $0x8] sm:$0xff]  ;;  %vm67_vm0 = vcmask 64512   ;;  %v1795_v2 = vld [vmem:[%s2227_s3 + $0x10] sm:$0xff]  ;;  %s2096_s5 = sld [smem:[#allocation6 + $0x2]]  ;;  %s2098_s6 = sld [smem:[#allocation6 + $0x3]] }
  0x1d   :  { %v145_v3 = vsel %vm67_vm0, %v1785_v0, 0  ;;  %v148_v4 = vsel %vm67_vm0, %v1790_v1, 0  ;;  %v1804_v5 = vld [vmem:[%s2227_s3 + $0x18] sm:$0xff]  ;;  %v151_v6 = vsel %vm67_vm0, %v1795_v2, 0  ;;  %v1813_v11 = vld [vmem:[%s2227_s3 + $0x20] sm:$0xff]  ;;  %v1818_v12 = vld [vmem:[%s2227_s3 + $0x28] sm:$0xff] }
  0x1e   :  { %v193_v7 = vand.u32 4294901760, %v145_v3  ;;  %v196_v8 = vand.u32 4294901760, %v148_v4  ;;  %v154_v9 = vsel %vm67_vm0, %v1804_v5, 0  ;;  %v199_v10 = vand.u32 4294901760, %v151_v6  ;;  %v1835_v18 = vld [vmem:[%s2226_s2] sm:$0xff]  ;;  %v1842_v21 = vld [vmem:[%s2227_s3 + $0x30] sm:$0xff] }
  0x1f   :  { %v202_v13 = vand.u32 4294901760, %v154_v9  ;;  %v157_v16 = vsel %vm67_vm0, %v1813_v11, 0  ;;  %v160_v17 = vsel %vm67_vm0, %v1818_v12, 0  ;;  %v1847_v22 = vld [vmem:[%s2227_s3 + $0x38] sm:$0xff]  ;;  %v139_v23 = vsel %vm67_vm0, %v1835_v18, 0  ;;  %v1870_v32 = vld [vmem:[%s2227_s3 + $0x40] sm:$0xff] }
  0x20   :  { %v1820_v14 = vpack.c.bf16 %v196_v8, %v193_v7  ;;  %v205_v19 = vand.u32 4294901760, %v157_v16  ;;  %v208_v20 = vand.u32 4294901760, %v160_v17  ;;  %v1851_v24 = vand.u32 4294901760, %v139_v23  ;;  %v1875_v33 = vld [vmem:[%s2227_s3 + $0x48] sm:$0xff]  ;;  %v1891_v41 = vld [vmem:[%s2227_s3 + $0x50] sm:$0xff]  ;;  %v1896_v42 = vld [vmem:[%s2227_s3 + $0x58] sm:$0xff] }
  0x21   :  { %v1822_v15 = vpack.c.bf16 %v202_v13, %v199_v10  ;;  %v163_v26 = vsel %vm67_vm0, %v1842_v21, 0  ;;  %v166_v27 = vsel %vm67_vm0, %v1847_v22, 0  ;;  %v169_v37 = vsel %vm67_vm0, %v1870_v32, 0  ;;  %v1943_v61 = vld [vmem:[%s2227_s3 + $0x60] sm:$0xff]  ;;  %v1948_v62 = vld [vmem:[%s2227_s3 + $0x68] sm:$0xff]  ;;  %s1027_s19 = sld [smem:[#allocation3]] }
  0x22   :  { %1456 = vmatprep.subr.bf16.mxu1 %v1820_v14  ;;  %1552 = vmatprep.subr.bf16.mxu0 %v1820_v14  ;;  %v1853_v25 = vpack.c.bf16 %v208_v20, %v205_v19  ;;  %v1860_v28 = vsub.f32 %v139_v23, %v1851_v24  ;;  %v211_v30 = vand.u32 4294901760, %v163_v26  ;;  %v214_v31 = vand.u32 4294901760, %v166_v27  ;;  %v1991_v23 = vld [vmem:[%s2226_s2 + $0x8] sm:$0xff]  ;;  %s2092_s2 = sld [smem:[#allocation6]]  ;;  %s1073_s9 = smul.f32 %s2096_s5, %s2096_s5 }
  0x23   :  { %1458 = vmatpush3.bf16.xpose.msra.mxu1 %v1820_v14  ;;  %1554 = vmatpush3.bf16.xpose.msra.mxu0 %v1820_v14  ;;  %v172_v38 = vsel %vm67_vm0, %v1875_v33, 0  ;;  %v217_v39 = vand.u32 4294901760, %v169_v37  ;;  %v175_v44 = vsel %vm67_vm0, %v1891_v41, 0  ;;  %v1902_v45 = vsub.f32 %v145_v3, %v193_v7  ;;  %s1095_s10 = smul.f32 %s2098_s6, %s2098_s6  ;;  %s1131_s20 = sld [smem:[#allocation3 + $0x1]] }
  0x24   :  { %1460 = vmatprep.subr.bf16.mxu1 %v1822_v15  ;;  %1556 = vmatprep.subr.bf16.mxu0 %v1822_v15  ;;  %v275_v29 = vand.u32 4294901760, %v1860_v28  ;;  %v1878_v36 = vpack.c.bf16 %v214_v31, %v211_v30  ;;  %v220_v40 = vand.u32 4294901760, %v172_v38  ;;  %v1904_v46 = vsub.f32 %v148_v4, %v196_v8  ;;  %s1133_s21 = sld [smem:[#allocation3 + $0x2]]  ;;  %s1135_s22 = sld [smem:[#allocation3 + $0x3]] }
  0x25   :  { %v1906_v47 = vsub.f32 %v151_v6, %v199_v10  ;;  %v1908_v48 = vsub.f32 %v154_v9, %v202_v13  ;;  %v178_v49 = vsel %vm67_vm0, %v1896_v42, 0  ;;  %v1912_v50 = vsub.f32 %v157_v16, %v205_v19  ;;  %v1984_v19 = vld [vmem:[%s2227_s3 + $0x78] sm:$0xff]  ;;  %s1748_s25 = smov [#allocation8]  }
  0x26   :  { %v276_v34 = vsub.f32 %v1860_v28, %v275_v29  ;;  %1382 = vmatprep.mubr.f32.mxu0 %v275_v29  ;;  %v1898_v43 = vpack.c.bf16 %v220_v40, %v217_v39  ;;  %v1914_v51 = vsub.f32 %v160_v17, %v208_v20  ;;  %v1918_v52 = vpack.c.bf16 %v1904_v46, %v1902_v45  ;;  %v1979_v17 = vld [vmem:[%s2227_s3 + $0x70] sm:$0xff]  ;;  %s2094_s3 = sld [smem:[#allocation6 + $0x1]]  ;;  %s1118_s26 = sshll.u32 %s1748_s25, 4  ;;  %s1119_s26 = int_to_ptr.vmem [resolvable:$true] %s1118_s26 }
  0x27   :  { %v1922_v53 = vpack.c.bf16 %v1908_v48, %v1906_v47  ;;  %v223_v54 = vand.u32 4294901760, %v175_v44  ;;  %v1926_v55 = vsub.f32 %v163_v26, %v211_v30  ;;  %v1928_v56 = vsub.f32 %v166_v27, %v214_v31  ;;  %s1029_s23 = smul.f32 %s1027_s19, %s1027_s19  ;;  %s1718_s27 = scalar_lea.vmem %s1119_s26, 1024 }
  0x28   :  { %v277_v35 = vand.u32 4294901760, %v276_v34  ;;  %v226_v57 = vand.u32 4294901760, %v178_v49  ;;  %v1932_v58 = vsub.f32 %v169_v37, %v217_v39  ;;  %v1934_v59 = vsub.f32 %v172_v38, %v220_v40  ;;  %s1030_s7 = smul.f32 %s2092_s2, %s2092_s2  ;;  %p1719_p10 = scmp.ne.s32.totalorder %s1119_s26, %s1718_s27 }
  0x29   :  { %v1938_v60 = vpack.c.bf16 %v1914_v51, %v1912_v50  ;;  %v1952_v63 = vpack.c.bf16 %v1928_v56, %v1926_v55  ;;  %v181_v6 = vsel %vm67_vm0, %v1943_v61, 0  ;;  %v184_v7 = vsel %vm67_vm0, %v1948_v62, 0  ;;  %s1050_s0 = smul.f32 %s1131_s20, %s1131_s20  ;;  %p1723_p11 = scmp.lt.s32.totalorder %s1119_s26, %s1119_s26 }
  0x2a   :  { %1277 = vmatprep.mubr.f32.mxu1 %v277_v35  ;;  %v1956_v3 = vpack.c.bf16 %v1934_v59, %v1932_v58  ;;  %v1958_v4 = vpack.c.bf16 %v226_v57, %v223_v54  ;;  %v1964_v8 = vsub.f32 %v175_v44, %v223_v54  ;;  %v1966_v9 = vsub.f32 %v178_v49, %v226_v57  ;;  %s1072_s1 = smul.f32 %s1133_s21, %s1133_s21  ;;  %p1724_p12 = scmp.lt.s32.totalorder %s1718_s27, %s1718_s27 }
  0x2b   :  { %1462 = vmatpush3.bf16.xpose.msra.mxu1 %v1822_v15  ;;  %1558 = vmatpush3.bf16.xpose.msra.mxu0 %v1822_v15  ;;  %v229_v13 = vand.u32 4294901760, %v181_v6  ;;  %v232_v16 = vand.u32 4294901760, %v184_v7  ;;  %v187_v26 = vsel %vm67_vm0, %v1979_v17, 0  ;;  %v190_v27 = vsel %vm67_vm0, %v1984_v19, 0  ;;  %s1094_s24 = smul.f32 %s1135_s22, %s1135_s22 }
  0x2c   :  { %1464 = vmatprep.subr.bf16.mxu1 %v1853_v25  ;;  %1560 = vmatprep.subr.bf16.mxu0 %v1853_v25  ;;  %2236 = vst [vmem:[#allocation12_spill] sm:$0xff] %v1958_v4  ;;  %v1972_v10 = vpack.c.bf16 %v1966_v9, %v1964_v8  ;;  %v142_v31 = vsel %vm67_vm0, %v1991_v23, 0  ;;  %v235_v35 = vand.u32 4294901760, %v187_v26  ;;  %v238_v37 = vand.u32 4294901760, %v190_v27  ;;  %s1051_s8 = smul.f32 %s2094_s3, %s2094_s3  ;;  %p1725_p13 = por %p1724_p12, %p1723_p11 }
  0x2d   :  { %v1986_v20 = vpack.c.bf16 %v232_v16, %v229_v13  ;;  %v1997_v29 = vsub.f32 %v181_v6, %v229_v13  ;;  %v1999_v30 = vsub.f32 %v184_v7, %v232_v16  ;;  %v296_v38 = vand.u32 4294901760, %v1902_v45 }
  0x2e   :  { %v303_v39 = vand.u32 4294901760, %v1904_v46  ;;  %v2013_v40 = vand.u32 4294901760, %v142_v31  ;;  %v2015_v44 = vpack.c.bf16 %v238_v37, %v235_v35  ;;  %v2019_v57 = vsub.f32 %v187_v26, %v235_v35  ;;  %p1726_p0 = pnand %p1725_p13, %p1719_p10 }
  0x2f   :  { %2237 = vst [vmem:[#allocation13_spill] sm:$0xff] %v1986_v20  ;;  %v2007_v34 = vpack.c.bf16 %v1999_v30, %v1997_v29  ;;  %v297_v49 = vsub.f32 %v1902_v45, %v296_v38  ;;  %v2021_v6 = vsub.f32 %v190_v27, %v238_v37  ;;  %v310_v16 = vand.u32 4294901760, %v1906_v47 }
  0x30   :  { %v304_v54 = vsub.f32 %v1904_v46, %v303_v39  ;;  %v2024_v7 = vsub.f32 %v142_v31, %v2013_v40  ;;  %v317_v26 = vand.u32 4294901760, %v1908_v48  ;;  %v1583_v35 = vpack.c.bf16 %v303_v39, %v296_v38 }
  0x31   :  { %2238 = vst [vmem:[#allocation14_spill] sm:$0xff] %v2007_v34  ;;  %v2030_v13 = vpack.c.bf16 %v2021_v6, %v2019_v57  ;;  %v298_v45 = vand.u32 4294901760, %v297_v49  ;;  %v311_v37 = vsub.f32 %v1906_v47, %v310_v16  ;;  %v324_v49 = vand.u32 4294901760, %v1912_v50 }
  0x32   :  { %2239 = vst [vmem:[#allocation15_spill] sm:$0xff] %v2024_v7  ;;  %v305_v46 = vand.u32 4294901760, %v304_v54  ;;  %v285_v27 = vand.u32 4294901760, %v2024_v7  ;;  %v1587_v39 = vpack.c.bf16 %v317_v26, %v310_v16  ;;  %vm903_vm1 = vcmask 130112  }
  0x33   :  { %1466 = vmatpush3.bf16.xpose.msra.mxu1 %v1853_v25  ;;  %1562 = vmatpush3.bf16.xpose.msra.mxu0 %v1853_v25  ;;  %2240 = vst [vmem:[#allocation16_spill] sm:$0xff] %v2030_v13  ;;  %v312_v54 = vand.u32 4294901760, %v311_v37  ;;  %v325_v38 = vsub.f32 %v1912_v50, %v324_v49  ;;  %v338_v37 = vand.u32 4294901760, %v1926_v55  ;;  %v77_v50 = vmul.f32 %v1804_v5, %v1804_v5 }
  0x34   :  { %1468 = vmatprep.subr.bf16.mxu1 %v1878_v36  ;;  %1564 = vmatprep.subr.bf16.mxu0 %v1878_v36  ;;  %v1487_v31 = vpack.c.bf16 %v305_v46, %v298_v45  ;;  %v286_v13 = vsub.f32 %v2024_v7, %v285_v27  ;;  %v76_v46 = vmul.f32 %v1795_v2, %v1795_v2  ;;  %vm910_vm2 = vcmask 195712  }
  0x35   :  { %v74_v7 = vmul.f32 %v1785_v0, %v1785_v0  ;;  %v99_v5 = vsel %vm67_vm0, %v77_v50, 0.0  ;;  %v366_v50 = vand.u32 4294901760, %v1964_v8  ;;  %vm917_vm3 = vcmask 261312  }
  0x36   :  { %v287_v45 = vand.u32 4294901760, %v286_v13  ;;  %v345_v13 = vand.u32 4294901760, %v1928_v56  ;;  %v96_v2 = vsel %vm67_vm0, %v76_v46, 0.0  ;;  %vm924_vm4 = vcmask 326912  }
  0x37   :  { %v90_v0 = vsel %vm67_vm0, %v74_v7, 0.0  ;;  %97 = vadd.xlane.f32.xlu1 %v96_v2  ;;  %v339_v7 = vsub.f32 %v1926_v55, %v338_v37  ;;  %v87_v2 = vmul.f32 %v1948_v62, %v1948_v62  ;;  %vm931_vm5 = vcmask 392512  }
  0x38   :  { %91 = vadd.xlane.f32.xlu0 %v90_v0  ;;  %v86_v0 = vmul.f32 %v1943_v61, %v1943_v61  ;;  %vm938_vm6 = vcmask 458112   ;;  %vm945_vm7 = vcmask 523712   ;;  %vm952_vm8 = vcmask 589312  }
  0x39   :  { %v129_v62 = vsel %vm67_vm0, %v87_v2, 0.0  ;;  %vm959_vm9 = vcmask 654912   ;;  %vm966_vm10 = vcmask 720512   ;;  %vm973_vm11 = vcmask 786112  }
  0x3a   :  { %v126_v61 = vsel %vm67_vm0, %v86_v0, 0.0  ;;  %vm980_vm12 = vcmask 851712   ;;  %vm987_vm13 = vcmask 917312   ;;  %vm994_vm14 = vcmask 982912  }
  0x3b   :  { %1470 = vmatpush3.bf16.xpose.msra.mxu1 %v1878_v36  ;;  %1566 = vmatpush3.bf16.xpose.msra.mxu0 %v1878_v36  ;;  %vm1001_vm15 = vcmask 1048512  }
  0x3c   :  { %1472 = vmatprep.subr.bf16.mxu1 %v1898_v43  ;;  %1568 = vmatprep.subr.bf16.mxu0 %v1898_v43 }
  0x3d   :  { %100 = vadd.xlane.f32.xlu1 %v99_v5 }
  0x43   :  { %1474 = vmatpush3.bf16.xpose.msra.mxu1 %v1898_v43  ;;  %1570 = vmatpush3.bf16.xpose.msra.mxu0 %v1898_v43 }
  0x44   :  { %1476 = vmatprep.subr.bf16.mxu1 %v1958_v4  ;;  %1572 = vmatprep.subr.bf16.mxu0 %v1958_v4 }
  0x4b   :  { %1478 = vmatpush3.bf16.xpose.msra.mxu1 %v1958_v4  ;;  %1574 = vmatpush3.bf16.xpose.msra.mxu0 %v1958_v4  ;;  %v331_v4 = vand.u32 4294901760, %v1914_v51 }
  0x4c   :  { %1480 = vmatprep.subr.bf16.mxu1 %v1986_v20  ;;  %1576 = vmatprep.subr.bf16.mxu0 %v1986_v20 }
  0x53   :  { %1482 = vmatpush3.bf16.xpose.msra.mxu1 %v1986_v20  ;;  %1578 = vmatpush3.bf16.xpose.msra.mxu0 %v1986_v20  ;;  %v318_v20 = vsub.f32 %v1908_v48, %v317_v26  ;;  %v332_v48 = vsub.f32 %v1914_v51, %v331_v4  ;;  %v78_v26 = vmul.f32 %v1813_v11, %v1813_v11 }
  0x54   :  { %1484 = vmatprep.subr.bf16.mxu1 %v2015_v44  ;;  %1580 = vmatprep.subr.bf16.mxu0 %v2015_v44  ;;  %v80_v11 = vmul.f32 %v1842_v21, %v1842_v21  ;;  %v82_v21 = vmul.f32 %v1870_v32, %v1870_v32  ;;  %v85_v32 = vmul.f32 %v1896_v42, %v1896_v42 }
  0x55   :  { %v319_v34 = vand.u32 4294901760, %v318_v20  ;;  %v326_v20 = vand.u32 4294901760, %v325_v38  ;;  %v333_v51 = vand.u32 4294901760, %v332_v48  ;;  %v1595_v48 = vpack.c.bf16 %v345_v13, %v338_v37 }
  0x56   :  { %v123_v42 = vsel %vm67_vm0, %v85_v32, 0.0 }
  0x57   :  { %v1491_v47 = vpack.c.bf16 %v319_v34, %v312_v54  ;;  %v75_v34 = vmul.f32 %v1790_v1, %v1790_v1  ;;  %v79_v1 = vmul.f32 %v1818_v12, %v1818_v12  ;;  %v81_v12 = vmul.f32 %v1847_v22, %v1847_v22 }
  0x58   :  { %v83_v22 = vmul.f32 %v1875_v33, %v1875_v33  ;;  %v114_v33 = vsel %vm67_vm0, %v82_v21, 0.0  ;;  %v394_v21 = vand.u32 4294901760, %v2019_v57 }
  0x59   :  { %v93_v16 = vsel %vm67_vm0, %v75_v34, 0.0  ;;  %v105_v54 = vsel %vm67_vm0, %v79_v1, 0.0  ;;  %v111_v38 = vsel %vm67_vm0, %v81_v12, 0.0  ;;  %v373_v34 = vand.u32 4294901760, %v1966_v9 }
  0x5a   :  { %94 = vadd.xlane.f32.xlu0 %v93_v16  ;;  %106 = vadd.xlane.f32.xlu1 %v105_v54  ;;  %v1052_v54 = vstv %s1051_s8  ;;  %v1074_v12 = vstv %s1073_s9 }
  0x5b   :  { %1486 = vmatpush3.bf16.xpose.msra.mxu1 %v2015_v44  ;;  %1582 = vmatpush3.bf16.xpose.msra.mxu0 %v2015_v44  ;;  %v374_v1 = vsub.f32 %v1966_v9, %v373_v34 }
  0x5c   :  { %1488 = vmatprep.subr.bf16.mxu1 %v1487_v31  ;;  %1584 = vmatprep.subr.bf16.mxu0 %v1583_v35 }
  0x5d   :  { %v375_v9 = vand.u32 4294901760, %v374_v1 }
  0x5e   :  { %112 = vadd.xlane.f32.xlu1 %v111_v38 }
  0x62   :  { %1278 = vmatmul.mubr.f32.vlgmr.msra.gmra.mrb[0].mxu1 %v287_v45  ;;  %1383 = vmatmul.mubr.f32.vlgmr.msra.gmra.mrb[0].mxu0 %v285_v27  ;;  %v1495_v27 = vpack.c.bf16 %v333_v51, %v326_v20  ;;  %v102_v45 = vsel %vm67_vm0, %v78_v26, 0.0  ;;  %v117_v51 = vsel %vm67_vm0, %v83_v22, 0.0 }
  0x63   :  { %1490 = vmatpush3.bf16.xpose.msra.mxu1 %v1487_v31  ;;  %1586 = vmatpush3.bf16.xpose.msra.mxu0 %v1583_v35  ;;  %v1591_v31 = vpack.c.bf16 %v331_v4, %v324_v49  ;;  %v346_v35 = vsub.f32 %v1928_v56, %v345_v13  ;;  %v340_v4 = vand.u32 4294901760, %v339_v7  ;;  %v352_v56 = vand.u32 4294901760, %v1932_v58 }
  0x64   :  { %1492 = vmatprep.subr.bf16.mxu1 %v1491_v47  ;;  %1588 = vmatprep.subr.bf16.mxu0 %v1587_v39  ;;  %v359_v49 = vand.u32 4294901760, %v1934_v59  ;;  %v367_v13 = vsub.f32 %v1964_v8, %v366_v50  ;;  %v89_v8 = vmul.f32 %v1984_v19, %v1984_v19  ;;  %v380_v19 = vand.u32 4294901760, %v1997_v29 }
  0x65   :  { %1312 = vmatprep.mubr.f32.mxu1 %v1851_v24  ;;  %1417 = vmatprep.mubr.f32.mxu0 %v1851_v24  ;;  %v347_v55 = vand.u32 4294901760, %v346_v35  ;;  %v353_v46 = vsub.f32 %v1932_v58, %v352_v56  ;;  %v84_v58 = vmul.f32 %v1891_v41, %v1891_v41  ;;  %v1031_v7 = vstv %s1030_s7 }
  0x66   :  { %103 = vadd.xlane.f32.xlu0 %v102_v45  ;;  %v360_v20 = vsub.f32 %v1934_v59, %v359_v49  ;;  %118 = vadd.xlane.f32.xlu1 %v117_v51  ;;  %v1599_v16 = vpack.c.bf16 %v359_v49, %v352_v56  ;;  %v368_v26 = vand.u32 4294901760, %v367_v13  ;;  %v1603_v35 = vpack.c.bf16 %v373_v34, %v366_v50 }
  0x67   :  { %v354_v59 = vand.u32 4294901760, %v353_v46  ;;  %v120_v41 = vsel %vm67_vm0, %v84_v58, 0.0  ;;  %1670 = vrcp.f32 %v1031_v7  ;;  %v66_v45 = vmul.f32 %v1991_v23, %v1991_v23 }
  0x68   :  { %v361_v37 = vand.u32 4294901760, %v360_v20  ;;  %1672 = vrcp.f32 %v1052_v54  ;;  %v1507_v56 = vpack.c.bf16 %v375_v9, %v368_v26  ;;  %v381_v49 = vsub.f32 %v1997_v29, %v380_v19 }
  0x69   :  { %1674 = vrcp.f32 %v1074_v12  ;;  %v71_v23 = vsel %vm67_vm0, %v66_v45, 0.0  ;;  %v395_v20 = vsub.f32 %v2019_v57, %v394_v21 }
  0x6a   :  { %v1503_v5 = vpack.c.bf16 %v361_v37, %v354_v59  ;;  %124 = vadd.xlane.f32.xlu1 %v123_v42  ;;  %v382_v22 = vand.u32 4294901760, %v381_v49 }
  0x6b   :  { %1494 = vmatpush3.bf16.xpose.msra.mxu1 %v1491_v47  ;;  %1590 = vmatpush3.bf16.xpose.msra.mxu0 %v1587_v39  ;;  %v108_v47 = vsel %vm67_vm0, %v80_v11, 0.0  ;;  %v1499_v39 = vpack.c.bf16 %v347_v55, %v340_v4  ;;  %v65_v4 = vmul.f32 %v1835_v18, %v1835_v18  ;;  %v1096_v55 = vstv %s1095_s10 }
  0x6c   :  { %1496 = vmatprep.subr.bf16.mxu1 %v1495_v27  ;;  %1592 = vmatprep.subr.bf16.mxu0 %v1591_v31  ;;  %1676 = vrcp.f32 %v1096_v55 }
  0x6d   :  { %109 = vadd.xlane.f32.xlu0 %v108_v47  ;;  %v68_v47 = vsel %vm67_vm0, %v65_v4, 0.0 }
  0x6e   :  { %130 = vadd.xlane.f32.xlu1 %v129_v62 }
  0x71   :  { %115 = vadd.xlane.f32.xlu0 %v114_v33  ;;  %v1671_v29 = vpop.eup %1670  ;;  %v396_v33 = vand.u32 4294901760, %v395_v20 }
  0x72   :  { %1657 = vpush %v1671_v29 }
  0x73   :  { %1498 = vmatpush3.bf16.xpose.msra.mxu1 %v1495_v27  ;;  %1594 = vmatpush3.bf16.xpose.msra.mxu0 %v1591_v31  ;;  %v88_v27 = vmul.f32 %v1979_v17, %v1979_v17  ;;  %v387_v31 = vand.u32 4294901760, %v1999_v30  ;;  %v135_v17 = vsel %vm67_vm0, %v89_v8, 0.0 }
  0x74   :  { %1500 = vmatprep.subr.bf16.mxu1 %v1499_v39  ;;  %1596 = vmatprep.subr.bf16.mxu0 %v1595_v48 }
  0x75   :  { %121 = vadd.xlane.f32.xlu0 %v120_v41  ;;  %v132_v11 = vsel %vm67_vm0, %v88_v27, 0.0  ;;  %v388_v38 = vsub.f32 %v1999_v30, %v387_v31  ;;  %136 = vadd.xlane.f32.xlu1 %v135_v17  ;;  %v1673_v30 = vpop.eup %1672  ;;  %v1607_v46 = vpack.c.bf16 %v387_v31, %v380_v19 }
  0x76   :  { %v1675_v34 = vpop.eup %1674  ;;  %1659 = vpush %v1673_v30 }
  0x77   :  { %v389_v18 = vand.u32 4294901760, %v388_v38  ;;  %v1677_v51 = vpop.eup %1676  ;;  %1661 = vpush %v1675_v34 }
  0x78   :  { %1663 = vpush %v1677_v51 }
  0x79   :  { %127 = vadd.xlane.f32.xlu0 %v126_v61  ;;  %72 = vadd.xlane.f32.xlu1 %v71_v23 }
  0x7b   :  { %1502 = vmatpush3.bf16.xpose.msra.mxu1 %v1499_v39  ;;  %1598 = vmatpush3.bf16.xpose.msra.mxu0 %v1595_v48  ;;  %v401_v39 = vand.u32 4294901760, %v2021_v6  ;;  %v1511_v48 = vpack.c.bf16 %v389_v18, %v382_v22 }
  0x7c   :  { %1504 = vmatprep.subr.bf16.mxu1 %v1503_v5  ;;  %1600 = vmatprep.subr.bf16.mxu0 %v1599_v16 }
  0x7d   :  { %133 = vadd.xlane.f32.xlu0 %v132_v11  ;;  %v402_v50 = vsub.f32 %v2021_v6, %v401_v39  ;;  %v1611_v59 = vpack.c.bf16 %v401_v39, %v394_v21 }
  0x7f   :  { %v403_v32 = vand.u32 4294901760, %v402_v50 }
  0x81   :  { %69 = vadd.xlane.f32.xlu0 %v68_v47  ;;  %v1515_v58 = vpack.c.bf16 %v403_v32, %v396_v33 }
  0x83   :  { %1506 = vmatpush3.bf16.xpose.msra.mxu1 %v1503_v5  ;;  %1602 = vmatpush3.bf16.xpose.msra.mxu0 %v1599_v16 }
  0x84   :  { %1508 = vmatprep.subr.bf16.mxu1 %v1507_v56  ;;  %1604 = vmatprep.subr.bf16.mxu0 %v1603_v35 }
  0x8b   :  { %1510 = vmatpush3.bf16.xpose.msra.mxu1 %v1507_v56  ;;  %1606 = vmatpush3.bf16.xpose.msra.mxu0 %v1603_v35 }
  0x8c   :  { %1512 = vmatprep.subr.bf16.mxu1 %v1511_v48  ;;  %1608 = vmatprep.subr.bf16.mxu0 %v1607_v46 }
  0x93   :  { %1514 = vmatpush3.bf16.xpose.msra.mxu1 %v1511_v48  ;;  %1610 = vmatpush3.bf16.xpose.msra.mxu0 %v1607_v46 }
  0x94   :  { %1516 = vmatprep.subr.bf16.mxu1 %v1515_v58  ;;  %1612 = vmatprep.subr.bf16.mxu0 %v1611_v59 }
  0x9b   :  { %1518 = vmatpush3.bf16.xpose.msra.mxu1 %v1515_v58  ;;  %1614 = vmatpush3.bf16.xpose.msra.mxu0 %v1611_v59 }
  0x9c   :  { %1520 = vmatprep.subr.bf16.mxu1 %v1918_v52  ;;  %1616 = vmatprep.subr.bf16.mxu0 %v1820_v14 }
  0xa2   :  { %1313 = vmatmul.mubr.f32.vlgmr.msra.gmra.mrb[0].mxu1 %v2013_v40  ;;  %1418 = vmatmul.mubr.f32.vlgmr.msra.gmra.mrb[0].mxu0 %v2013_v40 }
  0xa3   :  { %1522 = vmatpush3.bf16.xpose.msra.mxu1 %v1918_v52  ;;  %1618 = vmatpush3.bf16.xpose.msra.mxu0 %v1820_v14  ;;  %v2241_v14 = vld [vmem:[#allocation12_spill] sm:$0xff]  ;;  %s1658_s11 = spop %1657 }
  0xa4   :  { %1524 = vmatprep.subr.bf16.mxu1 %v1922_v53  ;;  %1620 = vmatprep.subr.bf16.mxu0 %v1822_v15  ;;  %s1034_s14 = smul.f32 -0.7213475, %s1658_s11 }
  0xa5   :  { %1347 = vmatprep.mubr.f32.mxu1 %v1860_v28  ;;  %1452 = vmatprep.mubr.f32.mxu0 %v1851_v24  ;;  %v2243_v24 = vld [vmem:[#allocation13_spill] sm:$0xff]  ;;  %v2245_v28 = vld [vmem:[#allocation15_spill] sm:$0xff] }
  0xa7   :  { %s1660_s12 = spop %1659 }
  0xa8   :  { %s1662_s13 = spop %1661  ;;  %s1055_s15 = smul.f32 -0.7213475, %s1660_s12 }
  0xa9   :  { %s1664_s16 = spop %1663  ;;  %s1077_s17 = smul.f32 -0.7213475, %s1662_s13 }
  0xaa   :  { %s1099_s18 = smul.f32 -0.7213475, %s1664_s16 }
  0xab   :  { %1526 = vmatpush3.bf16.xpose.msra.mxu1 %v1922_v53  ;;  %1622 = vmatpush3.bf16.xpose.msra.mxu0 %v1822_v15  ;;  %v2242_v15 = vld [vmem:[#allocation14_spill] sm:$0xff] }
  0xac   :  { %1528 = vmatprep.subr.bf16.mxu1 %v1938_v60  ;;  %1624 = vmatprep.subr.bf16.mxu0 %v1853_v25 }
  0xb3   :  { %1530 = vmatpush3.bf16.xpose.msra.mxu1 %v1938_v60  ;;  %1626 = vmatpush3.bf16.xpose.msra.mxu0 %v1853_v25  ;;  %v2244_v25 = vld [vmem:[#allocation16_spill] sm:$0xff] }
  0xb4   :  { %1532 = vmatprep.subr.bf16.mxu1 %v1952_v63  ;;  %1628 = vmatprep.subr.bf16.mxu0 %v1878_v36 }
  0xbb   :  { %1534 = vmatpush3.bf16.xpose.msra.mxu1 %v1952_v63  ;;  %1630 = vmatpush3.bf16.xpose.msra.mxu0 %v1878_v36  ;;  %v892_v36 = vlaneseq }
  0xbc   :  { %1536 = vmatprep.subr.bf16.mxu1 %v1956_v3  ;;  %1632 = vmatprep.subr.bf16.mxu0 %v1898_v43 }
  0xbd   :  { %v2178_v52 = vshrl.u32 %v892_v36, 7 }
  0xc3   :  { %1538 = vmatpush3.bf16.xpose.msra.mxu1 %v1956_v3  ;;  %1634 = vmatpush3.bf16.xpose.msra.mxu0 %v1898_v43  ;;  %v2176_v43 = vand.u32 127, %v892_v36 }
  0xc4   :  { %1540 = vmatprep.subr.bf16.mxu1 %v1972_v10  ;;  %1636 = vmatprep.subr.bf16.mxu0 %v2241_v14 }
  0xc5   :  { %v898_v53 = vadd.s32 4294967288, %v2176_v43  ;;  %v92_v60 = vpop.xlane.xlu0 %91  ;;  %v905_v63 = vadd.s32 4294967280, %v2176_v43  ;;  %v896_v3 = vsub.s32 %v2176_v43, %v2178_v52  ;;  %v912_v57 = vadd.s32 4294967272, %v2176_v43 }
  0xc6   :  { %v919_v42 = vadd.s32 4294967264, %v2176_v43  ;;  %v926_v16 = vadd.s32 4294967256, %v2176_v43  ;;  %v933_v61 = vadd.s32 4294967248, %v2176_v43  ;;  %v940_v7 = vadd.s32 4294967240, %v2176_v43 }
  0xc7   :  { %v897_v37 = vrot.slane %v92_v60, %v896_v3  ;;  %v915_v41 = vsub.s32 %v912_v57, %v2178_v52  ;;  %v947_v12 = vadd.s32 4294967232, %v2176_v43  ;;  %v954_v49 = vadd.s32 4294967224, %v2176_v43 }
  0xc8   :  { %v922_v1 = vsub.s32 %v919_v42, %v2178_v52  ;;  %v929_v27 = vsub.s32 %v926_v16, %v2178_v52  ;;  %v936_v35 = vsub.s32 %v933_v61, %v2178_v52  ;;  %v943_v11 = vsub.s32 %v940_v7, %v2178_v52 }
  0xc9   :  { %v950_v38 = vsub.s32 %v947_v12, %v2178_v52  ;;  %v961_v18 = vadd.s32 4294967216, %v2176_v43  ;;  %v957_v21 = vsub.s32 %v954_v49, %v2178_v52  ;;  %v968_v48 = vadd.s32 4294967208, %v2176_v43 }
  0xca   :  { %v975_v51 = vadd.s32 4294967200, %v2176_v43  ;;  %v989_v36 = vadd.s32 4294967184, %v2176_v43 }
  0xcb   :  { %1542 = vmatpush3.bf16.xpose.msra.mxu1 %v1972_v10  ;;  %1638 = vmatpush3.bf16.xpose.msra.mxu0 %v2241_v14  ;;  %v901_v10 = vsub.s32 %v898_v53, %v2178_v52  ;;  %v964_v46 = vsub.s32 %v961_v18, %v2178_v52  ;;  %v971_v33 = vsub.s32 %v968_v48, %v2178_v52  ;;  %v982_v14 = vadd.s32 4294967192, %v2176_v43 }
  0xcc   :  { %1544 = vmatprep.subr.bf16.mxu1 %v2242_v15  ;;  %1640 = vmatprep.subr.bf16.mxu0 %v2243_v24 }
  0xcd   :  { %v985_v53 = vsub.s32 %v982_v14, %v2178_v52 }
  0xd3   :  { %1546 = vmatpush3.bf16.xpose.msra.mxu1 %v2242_v15  ;;  %1642 = vmatpush3.bf16.xpose.msra.mxu0 %v2243_v24  ;;  %v978_v15 = vsub.s32 %v975_v51, %v2178_v52 }
  0xd4   :  { %1548 = vmatprep.subr.bf16.mxu1 %v2244_v25  ;;  %1644 = vmatprep.subr.bf16.mxu0 %v2015_v44 }
  0xdb   :  { %1550 = vmatpush3.bf16.xpose.msra.mxu1 %v2244_v25  ;;  %1646 = vmatpush3.bf16.xpose.msra.mxu0 %v2015_v44  ;;  %v98_v44 = vpop.xlane.xlu1 %97 }
  0xdf   :  { %v101_v0 = vpop.xlane.xlu1 %100 }
  0xe0   :  { %v916_v8 = vrot.slane %v101_v0, %v915_v41 }
  0xe2   :  { %1348 = vmatmul.mubr.f32.vlgmr.msra.gmra.mrb[0].mxu1 %v2245_v28  ;;  %1453 = vmatmul.mubr.f32.vlgmr.msra.gmra.mrb[0].mxu0 %v2013_v40  ;;  %v908_v40 = vsub.s32 %v905_v63, %v2178_v52 }
  0xe4   :  { %v909_v2 = vrot.slane %v98_v44, %v908_v40  ;;  %v992_v44 = vsub.s32 %v989_v36, %v2178_v52 }
  0xe7   :  { %v95_v6 = vpop.xlane.xlu0 %94  ;;  %v107_v9 = vpop.xlane.xlu1 %106 }
  0xe8   :  { %v902_v13 = vrot.slane %v95_v6, %v901_v10  ;;  %v930_v54 = vrot.slane %v107_v9, %v929_v27  ;;  %v996_v10 = vadd.s32 4294967176, %v2176_v43 }
  0xea   :  { %v904_v5 = vsel %vm903_vm1, %v902_v13, %v897_v37  ;;  %v999_v37 = vsub.s32 %v996_v10, %v2178_v52 }
  0xeb   :  { %v911_v62 = vsel %vm910_vm2, %v909_v2, %v904_v5  ;;  %v113_v4 = vpop.xlane.xlu1 %112 }
  0xec   :  { %v918_v31 = vsel %vm917_vm3, %v916_v8, %v911_v62  ;;  %v944_v23 = vrot.slane %v113_v4, %v943_v11  ;;  %v1080_v11 = vstv %s1077_s17 }
  0xf3   :  { %v104_v26 = vpop.xlane.xlu0 %103  ;;  %v119_v39 = vpop.xlane.xlu1 %118 }
  0xf4   :  { %v923_v19 = vrot.slane %v104_v26, %v922_v1  ;;  %v958_v20 = vrot.slane %v119_v39, %v957_v21  ;;  %v1042_v21 = vstv %s1029_s23 }
  0xf6   :  { %v925_v45 = vsel %vm924_vm4, %v923_v19, %v918_v31 }
  0xf7   :  { %v932_v56 = vsel %vm931_vm5, %v930_v54, %v925_v45  ;;  %v125_v32 = vpop.xlane.xlu1 %124  ;;  %v1037_v54 = vstv %s1034_s14  ;;  %v1058_v45 = vstv %s1055_s15 }
  0xf8   :  { %v972_v24 = vrot.slane %v125_v32, %v971_v33 }
  0xfa   :  { %v110_v17 = vpop.xlane.xlu0 %109 }
  0xfb   :  { %v937_v55 = vrot.slane %v110_v17, %v936_v35  ;;  %v131_v60 = vpop.xlane.xlu1 %130 }
  0xfc   :  { %v986_v57 = vrot.slane %v131_v60, %v985_v53 }
  0xfd   :  { %v939_v22 = vsel %vm938_vm6, %v937_v55, %v932_v56 }
  0xfe   :  { %v116_v47 = vpop.xlane.xlu0 %115  ;;  %v946_v30 = vsel %vm945_vm7, %v944_v23, %v939_v22 }
  0xff   :  { %v951_v29 = vrot.slane %v116_v47, %v950_v38  ;;  %v1102_v38 = vstv %s1099_s18 }
 0x101   :  { %v953_v34 = vsel %vm952_vm8, %v951_v29, %v946_v30  ;;  %v1063_v29 = vstv %s1050_s0 }
 0x102   :  { %v122_v50 = vpop.xlane.xlu0 %121  ;;  %v960_v59 = vsel %vm959_vm9, %v958_v20, %v953_v34  ;;  %v137_v13 = vpop.xlane.xlu1 %136 }
 0x103   :  { %v965_v58 = vrot.slane %v122_v50, %v964_v46  ;;  %v1000_v2 = vrot.slane %v137_v13, %v999_v37  ;;  %v1085_v50 = vstv %s1072_s1 }
 0x105   :  { %v967_v28 = vsel %vm966_vm10, %v965_v58, %v960_v59  ;;  %v1107_v58 = vstv %s1094_s24 }
 0x106   :  { %v128_v25 = vpop.xlane.xlu0 %127  ;;  %v974_v3 = vsel %vm973_vm11, %v972_v24, %v967_v28  ;;  %v73_v5 = vpop.xlane.xlu1 %72 }
 0x107   :  { %v979_v63 = vrot.slane %v128_v25, %v978_v15 }
 0x109   :  { %v981_v6 = vsel %vm980_vm12, %v979_v63, %v974_v3 }
 0x10a   :  { %v134_v40 = vpop.xlane.xlu0 %133  ;;  %v988_v41 = vsel %vm987_vm13, %v986_v57, %v981_v6 }
 0x10b   :  { %v993_v42 = vrot.slane %v134_v40, %v992_v44 }
 0x10d   :  { %v995_v0 = vsel %vm994_vm14, %v993_v42, %v988_v41 }
 0x10e   :  { %v70_v16 = vpop.xlane.xlu0 %69  ;;  %v1002_v43 = vsel %vm1001_vm15, %v1000_v2, %v995_v0 }
 0x10f   :  { %v1017_v52 = vadd.f32 %v1002_v43, %v73_v5  ;;  %v1016_v19 = vadd.f32 %v1002_v43, %v70_v16 }
 0x1b5   :  { %v1349_v1 = vpop.f32.mrb[0].mxu1  ;;  %v1454_v8 = vpop.f32.mrb[0].mxu0 }
 0x1b6   :  { %v1647_v26 = vadd.f32 %v1454_v8, %v1349_v1  ;;  %v550_v62 = vpop.f32.mrb[1].mxu1  ;;  %v866_v61 = vpop.f32.mrb[1].mxu0 }
 0x1b7   :  { %v1648_v27 = vadd.f32 %v866_v61, %v550_v62 }
 0x1b8   :  { %v1019_v9 = vmul.f32 2.0, %v1647_v26 }
 0x1b9   :  { %v1018_v31 = vmul.f32 2.0, %v1648_v27 }
 0x1ba   :  { %v1021_v7 = vsub.f32 %v1017_v52, %v1019_v9 }
 0x1bb   :  { %v1020_v35 = vsub.f32 %v1016_v19, %v1018_v31 }
 0x1bc   :  { %v1023_v17 = vmax.f32 %v1021_v7, 0.0 }
 0x1bd   :  { %v1022_v12 = vmax.f32 %v1020_v35, 0.0 }
 0x1be   :  { %v1039_v4 = vmul.f32 %v1037_v54, %v1023_v17  ;;  %v1060_v49 = vmul.f32 %v1058_v45, %v1023_v17  ;;  %v1082_v47 = vmul.f32 %v1080_v11, %v1023_v17  ;;  %v1104_v18 = vmul.f32 %v1102_v38, %v1023_v17 }
 0x1bf   :  { %v1038_v55 = vmul.f32 %v1037_v54, %v1022_v12  ;;  %v1059_v56 = vmul.f32 %v1058_v45, %v1022_v12  ;;  %v1081_v23 = vmul.f32 %v1080_v11, %v1022_v12  ;;  %v1103_v22 = vmul.f32 %v1102_v38, %v1022_v12 }
 0x1c0   :  { %1678 = vpow2.f32 %v1039_v4 }
 0x1c1   :  { %1680 = vpow2.f32 %v1038_v55 }
 0x1c2   :  { %1682 = vpow2.f32 %v1059_v56 }
 0x1c3   :  { %1684 = vpow2.f32 %v1060_v49 }
 0x1c4   :  { %1686 = vpow2.f32 %v1081_v23 }
 0x1c5   :  { %1688 = vpow2.f32 %v1082_v47 }
 0x1c6   :  { %1690 = vpow2.f32 %v1103_v22 }
 0x1c7   :  { %1692 = vpow2.f32 %v1104_v18 }
 0x1ca   :  { %v1679_v39 = vpop.eup %1678 }
 0x1cb   :  { %v1681_v30 = vpop.eup %1680  ;;  %v1044_v48 = vmul.f32 %v1679_v39, %v1042_v21 }
 0x1cc   :  { %v1683_v46 = vpop.eup %1682  ;;  %v1043_v20 = vmul.f32 %v1681_v30, %v1042_v21 }
 0x1cd   :  { %v1685_v34 = vpop.eup %1684  ;;  %1046 = vst [vmem:[#allocation8 + $0x8] sm:$0xff] %v1044_v48  ;;  %v1064_v51 = vmul.f32 %v1683_v46, %v1063_v29 }
 0x1ce   :  { %v1687_v33 = vpop.eup %1686  ;;  %1045 = vst [vmem:[#allocation8] sm:$0xff] %v1043_v20  ;;  %v1065_v32 = vmul.f32 %v1685_v34, %v1063_v29 }
 0x1cf   :  { %v1689_v59 = vpop.eup %1688  ;;  %1067 = vst [vmem:[#allocation8 + $0x10] sm:$0xff] %v1064_v51  ;;  %v1086_v14 = vmul.f32 %v1687_v33, %v1085_v50 }
 0x1d0   :  { %v1691_v15 = vpop.eup %1690  ;;  %1068 = vst [vmem:[#allocation8 + $0x18] sm:$0xff] %v1065_v32  ;;  %v1087_v24 = vmul.f32 %v1689_v59, %v1085_v50 }
 0x1d1   :  { %v1693_v25 = vpop.eup %1692  ;;  %1089 = vst [vmem:[#allocation8 + $0x20] sm:$0xff] %v1086_v14  ;;  %v1108_v28 = vmul.f32 %v1691_v15, %v1107_v58 }
 0x1d2   :  { %1090 = vst [vmem:[#allocation8 + $0x28] sm:$0xff] %v1087_v24  ;;  %v1109_v36 = vmul.f32 %v1693_v25, %v1107_v58 }
 0x1d3   :  { %1111 = vst [vmem:[#allocation8 + $0x30] sm:$0xff] %v1108_v28 }
 0x1d4   :  { %1112 = vst [vmem:[#allocation8 + $0x38] sm:$0xff] %v1109_v36 }
 0x1d5   :  { %1729 = shalt.err (!%p1726_p0)
}
 0x1d6   :  { %s1730_s30 = scalar_lea.hbm %s2228_s4, 1024 }
 0x1d7   :  { %p1731_p1 = scmp.ne.s32.totalorder %s2228_s4, %s1730_s30  ;;  %p1734_p2 = scmp.lt.u32.totalorder %s1730_s30, %s2228_s4 }
 0x1d9   :  { %p1736_p3 = pnand %p1734_p2, %p1731_p1 }
 0x1db   :  { %1739 = shalt.err (!%p1736_p3)
}
 0x1dc   :  { %s1749_s7 = smov 128   ;;  %s1750_s8 = smov 8  }
 0x1dd   :  { %1124 = dma.vmem_to_hbm [thread:$0]  %s1119_s26, 1024, %s2228_s4, [#allocation4], %s1749_s7, %s1749_s7, %s1750_s8  }
 0x1de   :  { %1744 = dma.done.wait [#allocation4], 1024  }
 0x1df   :  { %1745 = vsyncadd [#allocation4], 4294966272 }
 0x1e0   :  { %1128 = vsyncpa [#allocation4], 1 }
 0x1e1   :  { %1129 = vsyncpa [#allocation5], 1 }
 0x1e2   :  { %1130 = vsyncpa [#allocation7], 1 }

</bundles_post_ra>
